<compile_context>
chip_gen: v5e
topology: v5e:2x2
jax: 0.10.0
libtpu: 0.0.40
codegen_flags: <defaults>
</compile_context>

<pallas_src>
import functools

import jax
import jax.numpy as jnp
from jax import lax
from jax.experimental import pallas as pl
from jax.experimental.pallas import tpu as pltpu


# ----------------------------------------------------------------------------
# VMEM budgeting (generation aware; conservative fallback is v7x-safe).
# ----------------------------------------------------------------------------
def _vmem_budget_bytes():
    cap = 64 * 1024 * 1024  # v7x-safe fallback
    try:
        info = pltpu.get_tpu_info()
        cap = int(getattr(info, "vmem_capacity_bytes", cap)) or cap
    except Exception:
        pass
    # Leave scheduling headroom: ~48 MiB on v7x (64 MiB phys), 96 MiB on v5e/v6e.
    return min(96 * 1024 * 1024, max(32 * 1024 * 1024, (cap * 3) // 4))


def _choose_row_tile(rows, hw, block_target_bytes):
    """Largest multiple-of-8 row tile whose f32 working set stays ~block_target."""
    bytes_per_row = hw * 4
    tr = max(8, (block_target_bytes // max(bytes_per_row, 1)) // 8 * 8)
    tr = min(tr, pl.cdiv(rows, 8) * 8)          # never much bigger than the problem
    # Keep >= 8 grid steps when the problem is big enough (v7x has 2 TCs).
    min_steps = 8
    if rows >= 8 * min_steps:
        tr = min(tr, max(8, (rows // min_steps) // 8 * 8))
    return tr


# ----------------------------------------------------------------------------
# Fused single-pass kernel: whole-row reduction + one-FMA apply.
#   scale = gain * rsqrt(var + eps),  shift = bias - mean * scale
# ----------------------------------------------------------------------------
def _fused_norm_kernel(x_ref, gb_ref, o_ref, *, eps, inv_hw):
    x = x_ref[...].astype(jnp.float32)                      # [TR, HW]
    s = jnp.sum(x, axis=-1, keepdims=True)                  # [TR, 1]
    sq = jnp.sum(x * x, axis=-1, keepdims=True)             # [TR, 1]
    mean = s * inv_hw
    var = jnp.maximum(sq * inv_hw - mean * mean, 0.0)       # biased var (torch)
    gb = gb_ref[...].astype(jnp.float32)                    # [TR, 2] = (gain, bias)
    scale = gb[:, 0:1] * lax.rsqrt(var + eps)
    shift = gb[:, 1:2] - mean * scale
    o_ref[...] = (x * scale + shift).astype(o_ref.dtype)    # one FMA / element


# ----------------------------------------------------------------------------
# Large-HW fallback, pass 1: lane-chunked reduction -> per-row (scale, shift).
# ----------------------------------------------------------------------------
def _stats_kernel(x_ref, gb_ref, ss_ref, sum_sc, sq_sc, *, eps, hw, thw):
    k = pl.program_id(1)

    @pl.when(k == 0)
    def _():
        sum_sc[...] = jnp.zeros_like(sum_sc)
        sq_sc[...] = jnp.zeros_like(sq_sc)

    x = x_ref[...].astype(jnp.float32)                      # [TR, THW]
    lane = lax.broadcasted_iota(jnp.int32, x.shape, 1) + k * thw
    xm = jnp.where(lane < hw, x, 0.0)                       # mask ragged lane chunk
    sum_sc[...] += jnp.sum(xm, axis=-1, keepdims=True)
    sq_sc[...] += jnp.sum(xm * xm, axis=-1, keepdims=True)

    @pl.when(k == pl.num_programs(1) - 1)
    def _():
        inv = 1.0 / hw
        mean = sum_sc[...] * inv
        var = jnp.maximum(sq_sc[...] * inv - mean * mean, 0.0)
        gb = gb_ref[...].astype(jnp.float32)
        scale = gb[:, 0:1] * lax.rsqrt(var + eps)
        shift = gb[:, 1:2] - mean * scale
        ss_ref[...] = jnp.concatenate([scale, shift], axis=-1)


# ----------------------------------------------------------------------------
# Large-HW fallback, pass 2: apply x * scale + shift, lane-chunked.
# ----------------------------------------------------------------------------
def _apply_kernel(x_ref, ss_ref, o_ref):
    x = x_ref[...].astype(jnp.float32)
    ss = ss_ref[...]
    o_ref[...] = (x * ss[:, 0:1] + ss[:, 1:2]).astype(o_ref.dtype)


# ----------------------------------------------------------------------------
# Wrapper
# ----------------------------------------------------------------------------
def cond_instance_norm2d(x, y, w_gain, b_gain, w_bias, b_bias, *, eps=1e-5,
                         block_target_bytes=None):
    """x: [B, C, H, W] (NCHW), y: [B, in_features].

    w_gain / w_bias: [C, in_features]; b_gain / b_bias: [C] or [1, C].
    """
    B, C, H, W = x.shape
    HW = H * W
    R = B * C

    vmem_limit = _vmem_budget_bytes()
    if block_target_bytes is None:
        block_target_bytes = max(512 * 1024, vmem_limit // 12)

    # --- conditioning linears (tiny: far below one MXU tile) -> wrapper -------
    w_cat = jnp.concatenate([w_gain, w_bias], axis=0)                      # [2C, F]
    b_cat = jnp.concatenate(
        [jnp.reshape(b_gain, (-1,)), jnp.reshape(b_bias, (-1,))], axis=0)  # [2C]
    proj = jnp.dot(y.astype(jnp.float32), w_cat.astype(jnp.float32).T,
                   preferred_element_type=jnp.float32) + b_cat             # [B, 2C]
    gain = 1.0 + proj[:, :C]                                               # [B, C]
    bias = proj[:, C:]                                                     # [B, C]

    # --- flatten to lane-dense rows -------------------------------------------
    x2 = x.reshape(R, HW)
    gb = jnp.concatenate([gain.reshape(R, 1), bias.reshape(R, 1)], axis=1)  # [R, 2]

    itemsize = jnp.dtype(x.dtype).itemsize
    cost = pl.CostEstimate(flops=5 * R * HW,
                           transcendentals=R,
                           bytes_accessed=2 * R * HW * itemsize + R * 8)

    if 8 * HW * 4 <= block_target_bytes:
        # ---- fused single-pass path (full-width rows) ------------------------
        TR = _choose_row_tile(R, HW, block_target_bytes)
        grid = (pl.cdiv(R, TR),)                       # ragged last block is fine
        out2 = pl.pallas_call(
            functools.partial(_fused_norm_kernel, eps=eps, inv_hw=1.0 / HW),
            out_shape=jax.ShapeDtypeStruct((R, HW), x.dtype),
            grid_spec=pltpu.PrefetchScalarGridSpec(
                num_scalar_prefetch=0,
                grid=grid,
                in_specs=[
                    pl.BlockSpec((TR, HW), lambda i: (i, 0)),
                    pl.BlockSpec((TR, 2), lambda i: (i, 0)),
                ],
                out_specs=pl.BlockSpec((TR, HW), lambda i: (i, 0)),
            ),
            compiler_params=pltpu.CompilerParams(
                dimension_semantics=("parallel",),
                vmem_limit_bytes=vmem_limit,
            ),
            cost_estimate=cost,
        )(x2, gb)
    else:
        # ---- large-HW path: lane-chunked stats + apply (VMEM-safe) -----------
        TR = 8
        THW = max(128, (block_target_bytes // (TR * 4)) // 128 * 128)
        THW = min(THW, pl.cdiv(HW, 128) * 128)
        nr = pl.cdiv(R, TR)
        nk = pl.cdiv(HW, THW)

        ss = pl.pallas_call(
            functools.partial(_stats_kernel, eps=eps, hw=HW, thw=THW),
            out_shape=jax.ShapeDtypeStruct((R, 2), jnp.float32),
            grid_spec=pltpu.PrefetchScalarGridSpec(
                num_scalar_prefetch=0,
                grid=(nr, nk),
                in_specs=[
                    pl.BlockSpec((TR, THW), lambda i, k: (i, k)),
                    pl.BlockSpec((TR, 2), lambda i, k: (i, 0)),
                ],
                out_specs=pl.BlockSpec((TR, 2), lambda i, k: (i, 0)),
                scratch_shapes=[pltpu.VMEM((TR, 1), jnp.float32),
                                pltpu.VMEM((TR, 1), jnp.float32)],
            ),
            compiler_params=pltpu.CompilerParams(
                dimension_semantics=("parallel", "arbitrary"),
                vmem_limit_bytes=vmem_limit,
            ),
        )(x2, gb)

        out2 = pl.pallas_call(
            _apply_kernel,
            out_shape=jax.ShapeDtypeStruct((R, HW), x.dtype),
            grid_spec=pltpu.PrefetchScalarGridSpec(
                num_scalar_prefetch=0,
                grid=(nr, nk),
                in_specs=[
                    pl.BlockSpec((TR, THW), lambda i, k: (i, k)),
                    pl.BlockSpec((TR, 2), lambda i, k: (i, 0)),
                ],
                out_specs=pl.BlockSpec((TR, THW), lambda i, k: (i, k)),
            ),
            compiler_params=pltpu.CompilerParams(
                dimension_semantics=("parallel", "parallel"),
                vmem_limit_bytes=vmem_limit,
            ),
            cost_estimate=cost,
        )(x2, ss)

    return out2.reshape(B, C, H, W)


# ----------------------------------------------------------------------------
# Pure-JAX reference (mirrors F.instance_norm + conditional affine).
# ----------------------------------------------------------------------------
def _reference(x, y, w_gain, b_gain, w_bias, b_bias, eps=1e-5):
    gain = 1.0 + (y @ w_gain.T + b_gain.reshape(-1))          # [B, C]
    bias = y @ w_bias.T + b_bias.reshape(-1)                  # [B, C]
    mean = x.mean(axis=(2, 3), keepdims=True)
    var = x.var(axis=(2, 3), keepdims=True)                   # biased (ddof=0)
    x_hat = (x - mean) / jnp.sqrt(var + eps)
    return x_hat * gain[:, :, None, None] + bias[:, :, None, None]


def _make_case(key, B, C, H, W, in_features):
    kx, ky, kwg, kbg, kwb, kbb = jax.random.split(key, 6)
    x = jax.random.normal(kx, (B, C, H, W), dtype=jnp.float32)
    y = jax.random.normal(ky, (B, in_features), dtype=jnp.float32)
    w_gain = 0.1 * jax.random.normal(kwg, (C, in_features), dtype=jnp.float32)
    b_gain = 0.05 * jax.random.normal(kbg, (1, C), dtype=jnp.float32)
    w_bias = 0.1 * jax.random.normal(kwb, (C, in_features), dtype=jnp.float32)
    b_bias = 0.05 * jax.random.normal(kbb, (1, C), dtype=jnp.float32)
    return x, y, w_gain, b_gain, w_bias, b_bias


if __name__ == "__main__":
    eps = 1e-5
    key = jax.random.PRNGKey(0)
    k1, k2, k3 = jax.random.split(key, 3)

    # --- Test 1: baseline small shapes (fused single-pass path) --------------
    args = _make_case(k1, B=2, C=4, H=16, W=16, in_features=8)
    out = jax.block_until_ready(cond_instance_norm2d(*args, eps=eps))
    ref = _reference(*args, eps=eps)
    assert out.shape == (2, 4, 16, 16)
    assert jnp.allclose(out, ref, atol=1e-4, rtol=1e-4), "mismatch (fused path)"

    # --- Test 2: ragged row count (R=15 not a multiple of the row tile) ------
    args = _make_case(k2, B=3, C=5, H=16, W=16, in_features=8)
    out = jax.block_until_ready(cond_instance_norm2d(*args, eps=eps))
    ref = _reference(*args, eps=eps)
    assert out.shape == (3, 5, 16, 16)
    assert jnp.allclose(out, ref, atol=1e-4, rtol=1e-4), "mismatch (ragged rows)"

    # --- Test 3: force the lane-chunked large-HW fallback ---------------------
    args = _make_case(k3, B=2, C=4, H=48, W=48, in_features=8)
    out = jax.block_until_ready(
        cond_instance_norm2d(*args, eps=eps, block_target_bytes=64 * 1024))
    ref = _reference(*args, eps=eps)
    assert out.shape == (2, 4, 48, 48)
    assert jnp.allclose(out, ref, atol=1e-4, rtol=1e-4), "mismatch (chunked path)"

    print("KERNEL_OK")
</pallas_src>

<mosaic_0001>
module attributes {stable_mosaic.version = 11 : i64} {
  func.func @_fused_norm_kernel(%arg0: i32, %arg1: memref<8x256xf32, #tpu.memory_space<vmem>>, %arg2: memref<8x2xf32, #tpu.memory_space<vmem>>, %arg3: memref<8x256xf32, #tpu.memory_space<vmem>>) attributes {dimension_semantics = [#tpu.dimension_semantics<parallel>], iteration_bounds = array<i64: 1>, scalar_prefetch = 0 : i64, scratch_operands = 0 : i64, tpu.core_type = #tpu.core_type<tc>, window_params = [{transform_indices = @transform_0, window_bounds = array<i64: 8, 256>}, {transform_indices = @transform_1, window_bounds = array<i64: 8, 2>}, {transform_indices = @transform_2, window_bounds = array<i64: 8, 256>}]} {
    %c0 = arith.constant 0 : index
    %c0_0 = arith.constant 0 : index
    %0 = vector.load %arg1[%c0, %c0_0] : memref<8x256xf32, #tpu.memory_space<vmem>>, vector<8x256xf32>
    %cst = arith.constant dense<0.000000e+00> : vector<8xf32>
    %1 = vector.multi_reduction <add>, %0, %cst [1] : vector<8x256xf32> to vector<8xf32>
    %2 = vector.shape_cast %1 : vector<8xf32> to vector<8x1xf32>
    %3 = arith.mulf %0, %0 : vector<8x256xf32>
    %cst_1 = arith.constant dense<0.000000e+00> : vector<8xf32>
    %4 = vector.multi_reduction <add>, %3, %cst_1 [1] : vector<8x256xf32> to vector<8xf32>
    %5 = vector.shape_cast %4 : vector<8xf32> to vector<8x1xf32>
    %cst_2 = arith.constant 3.906250e-03 : f32
    %6 = vector.broadcast %cst_2 : f32 to vector<8x1xf32>
    %7 = arith.mulf %2, %6 : vector<8x1xf32>
    %cst_3 = arith.constant 3.906250e-03 : f32
    %8 = vector.broadcast %cst_3 : f32 to vector<8x1xf32>
    %9 = arith.mulf %5, %8 : vector<8x1xf32>
    %10 = arith.mulf %7, %7 : vector<8x1xf32>
    %11 = arith.subf %9, %10 : vector<8x1xf32>
    %cst_4 = arith.constant 0.000000e+00 : f32
    %12 = vector.broadcast %cst_4 : f32 to vector<8x1xf32>
    %13 = arith.maximumf %11, %12 : vector<8x1xf32>
    %c0_5 = arith.constant 0 : index
    %c0_6 = arith.constant 0 : index
    %14 = vector.load %arg2[%c0_5, %c0_6] : memref<8x2xf32, #tpu.memory_space<vmem>>, vector<8x2xf32>
    %15 = vector.extract_strided_slice %14 {offsets = [0, 0], sizes = [8, 1], strides = [1, 1]} : vector<8x2xf32> to vector<8x1xf32>
    %cst_7 = arith.constant 9.99999974E-6 : f32
    %16 = vector.broadcast %cst_7 : f32 to vector<8x1xf32>
    %17 = arith.addf %13, %16 : vector<8x1xf32>
    %18 = math.rsqrt %17 : vector<8x1xf32>
    %19 = arith.mulf %15, %18 : vector<8x1xf32>
    %20 = vector.extract_strided_slice %14 {offsets = [0, 1], sizes = [8, 1], strides = [1, 1]} : vector<8x2xf32> to vector<8x1xf32>
    %21 = arith.mulf %7, %19 : vector<8x1xf32>
    %22 = arith.subf %20, %21 : vector<8x1xf32>
    %23 = vector.broadcast %19 : vector<8x1xf32> to vector<8x256xf32>
    %24 = arith.mulf %0, %23 : vector<8x256xf32>
    %25 = vector.broadcast %22 : vector<8x1xf32> to vector<8x256xf32>
    %26 = arith.addf %24, %25 : vector<8x256xf32>
    %c0_8 = arith.constant 0 : index
    %c0_9 = arith.constant 0 : index
    %27 = vector.load %arg3[%c0_8, %c0_9] : memref<8x256xf32, #tpu.memory_space<vmem>>, vector<8x256xf32>
    tpu.vector_store %arg3[%c0_8, %c0_9], %26 {strides = array<i32>} : memref<8x256xf32, #tpu.memory_space<vmem>>, vector<8x256xf32>,
    return
  }
  func.func @transform_0(%arg0: i32) -> (i32, i32) {
    %c0_i32 = arith.constant 0 : i32
    %c0_i32_0 = arith.constant 0 : i32
    return %arg0, %c0_i32 : i32, i32
  }
  func.func @transform_1(%arg0: i32) -> (i32, i32) {
    %c0_i32 = arith.constant 0 : i32
    %c0_i32_0 = arith.constant 0 : i32
    return %arg0, %c0_i32 : i32, i32
  }
  func.func @transform_2(%arg0: i32) -> (i32, i32) {
    %c0_i32 = arith.constant 0 : i32
    %c0_i32_0 = arith.constant 0 : i32
    return %arg0, %c0_i32 : i32, i32
  }
}

</mosaic_0001>

<bundles_post_ra>
// kernel: tpu_custom_call.1
= control target key start
LH: loop header
LB: loop body
LE: loop exit
PB: predicated region body
PF: predicated region fallthrough
CT: control target
= control target key end

     0   :  { %7 = vsyncpa [#allocation3], 0  ;;  %s184_s0 = inlined_call_operand.hbm [shape: f32[8,256], index: 0, kind: input, shape index: {}]   ;;  %s185_s1 = inlined_call_operand.vmem [shape: f32[8,2], index: 1, kind: input, shape index: {}]   ;;  %s186_s2 = inlined_call_operand.hbm [shape: f32[8,256], index: 2, kind: output, shape index: {}]  }
   0x1   :  { %8 = vsyncpa [#allocation4], 0  ;;  %s14_s11 = sshll.u32 %s184_s0, 4  ;;  %s155_s12 = smov [#allocation2]   ;;  %s15_s11 = int_to_ptr.hbm [resolvable:$true] %s14_s11 }
   0x2   :  { %s16_s13 = sshll.u32 %s155_s12, 4  ;;  %s17_s13 = int_to_ptr.vmem [resolvable:$true] %s16_s13 }
   0x3   :  { %19 = dma.hbm_to_vmem [thread:$0]  %s15_s11, 256, %s17_s13, [#allocation3]  }
   0x4   :  { %151 = dma.done.wait [#allocation3], 256  }
   0x5   :  { %152 = vsyncadd [#allocation3], 4294967040  ;;  %v26_v0 = vld [vmem:[#allocation2] sm:$0xff]  ;;  %v27_v1 = vld [vmem:[#allocation2 + $0x8] sm:$0xff]  ;;  %v156_v9 = vmov 0   ;;  %s157_s15 = smov 1  }
   0x6   :  { %v28_v2 = vadd.f32 %v27_v1, %v26_v0  ;;  %v31_v3 = vmul.f32 %v26_v0, %v26_v0  ;;  %v32_v4 = vmul.f32 %v27_v1, %v27_v1  ;;  %98 = vset.pattern.permute.xlu1 %v156_v9  ;;  %v41_v20 = vld [vmem:[%s185_s1] sm:$0xff]  ;;  %v158_v25 = vmov 1   ;;  %s159_s16 = smov [#allocation5]   ;;  %s83_s19 = sshll.u32 %s186_s2, 4  ;;  %s84_s19 = int_to_ptr.hbm [resolvable:$true] %s83_s19 }
   0x7   :  { %99 = vset.pattern.permute.xlu2 %v158_v25  ;;  %100 = vset.pattern.permute.xlu0 %v158_v25  ;;  %s81_s17 = sshll.u32 %s159_s16, 4  ;;  %s82_s17 = int_to_ptr.vmem [resolvable:$true] %s81_s17 }
   0x8   :  { %29 = vadd.xlane.f32.xlu0 %v28_v2  ;;  %v33_v5 = vadd.f32 %v32_v4, %v31_v3 }
  0x10   :  { %34 = vadd.xlane.f32.xlu0 %v33_v5 }
  0x7b   :  { %v30_v6 = vpop.xlane.xlu0 %29 }
  0x7c   :  { %v36_v7 = vmul.f32 0.00390625, %v30_v6 }
  0x7e   :  { %v38_v10 = vmul.f32 %v36_v7, %v36_v7 }
  0x83   :  { %v35_v8 = vpop.xlane.xlu0 %34 }
  0x84   :  { %v37_v11 = vmul.f32 0.00390625, %v35_v8 }
  0x86   :  { %v39_v12 = vsub.f32 %v37_v11, %v38_v10 }
  0x88   :  { %v40_v13 = vmax.f32 %v39_v12, 0.0 }
  0x8a   :  { %v42_v14 = vadd.f32 1e-05, %v40_v13 }
  0x8c   :  { %101 = vrsqrt.f32 %v42_v14  ;;  %vm49_vm1 = vweird.f32 %v42_v14 }
  0x92   :  { %v102_v15 = vpop.eup %101 }
  0x93   :  { %v44_v16 = vmul.f32 %v102_v15, %v42_v14  ;;  %vm50_vm0 = vweird.f32 %v102_v15 }
  0x94   :  { %vm51_vm2 = vmor %vm49_vm1, %vm50_vm0 }
  0x95   :  { %v45_v17 = vmul.f32 %v102_v15, %v44_v16 }
  0x97   :  { %v46_v18 = vmul.f32 0.5, %v45_v17 }
  0x99   :  { %v47_v19 = vsub.f32 1.5, %v46_v18 }
  0x9b   :  { %v48_v21 = vmul.f32 %v102_v15, %v47_v19 }
  0x9d   :  { %v52_v22 = vsel %vm51_vm2, %v102_v15, %v48_v21 }
  0x9e   :  { %v53_v23 = vmul.f32 %v52_v22, %v41_v20 }
  0xa0   :  { %v54_v24 = vmul.f32 %v53_v23, %v36_v7 }
  0xa2   :  { %56 = vrot.lane.b32.xlu1 %v54_v24, %s157_s15 }
  0xaa   :  { %62 = vperm.xlu1 %98, %v53_v23  }
 0x114   :  { %v57_v26 = vpop.permute.xlu1 %56 }
 0x115   :  { %v59_v27 = vsub.f32 %v41_v20, %v57_v26 }
 0x117   :  { %69 = vperm.xlu2 %99, %v59_v27  }
 0x11c   :  { %v63_v28 = vpop.permute.xlu1 %62 }
 0x11d   :  { %v65_v29 = vmul.f32 %v63_v28, %v26_v0  ;;  %v66_v30 = vmul.f32 %v63_v28, %v27_v1 }
 0x171   :  { %v70_v31 = vpop.permute.xlu2 %69 }
 0x172   :  { %v72_v32 = vadd.f32 %v70_v31, %v65_v29  ;;  %v73_v33 = vadd.f32 %v70_v31, %v66_v30 }
 0x174   :  { %74 = vst [vmem:[#allocation5] sm:$0xff] %v72_v32 }
 0x175   :  { %75 = vst [vmem:[#allocation5 + $0x8] sm:$0xff] %v73_v33 }
 0x176   :  { %86 = dma.vmem_to_hbm [thread:$0]  %s82_s17, 256, %s84_s19, [#allocation4]  }
 0x177   :  { %153 = dma.done.wait [#allocation4], 256  }
 0x178   :  { %154 = vsyncadd [#allocation4], 4294967040 }
 0x179   :  { %91 = vsyncpa [#allocation3], 1 }
 0x17a   :  { %92 = vsyncpa [#allocation4], 1 }

</bundles_post_ra>
